<compile_context>
chip_gen: v7x
topology: tpu7x:2x2x1
jax: 0.10.0
libtpu: 0.0.40
codegen_flags: <defaults>
</compile_context>

<pallas_src>
import math

import jax
import jax.numpy as jnp
from jax.experimental import pallas as pl
from jax.experimental.pallas import tpu as pltpu

EPS = 1e-5  # nn.GroupNorm default


# ---------------------------------------------------------------------------
# Generation-aware VMEM sizing / tile-selection helpers
# ---------------------------------------------------------------------------
def _vmem_capacity_bytes() -> int:
    try:
        cap = getattr(pltpu.get_tpu_info(), "vmem_capacity_bytes", None)
        if cap:
            return int(cap)
    except Exception:  # capability probe only; fall back to the common 128 MiB
        pass
    return 128 * 1024 * 1024  # v5e / v6e physical VMEM


def _vmem_limit_bytes() -> int:
    # Never request all of VMEM (Mosaic needs internal scratch + double
    # buffers): v7x (64 MiB) -> 48 MiB, v5e/v6e (128 MiB) -> 96 MiB.
    return min(int(_vmem_capacity_bytes() * 3 // 4), 100 * 1024 * 1024)


def _pick_tile(S: int, target: int, quantum: int = 128) -> int:
    """Largest tile <= target that divides S, preferring multiples of `quantum`
    (keeps blocks lane/sublane aligned); falls back to any divisor of S."""
    target = min(target, S)
    if target == S:
        return S
    t = (target // quantum) * quantum
    while t >= quantum:
        if S % t == 0:
            return t
        t -= quantum
    for t in range(target, 0, -1):
        if S % t == 0:
            return t
    return S


# ---------------------------------------------------------------------------
# Kernel 1: GroupNorm affine (pre-computed stats) + fused bf16 QKV projection
# ---------------------------------------------------------------------------
def _gn_qkv_kernel(x_ref, scale_ref, shift_ref, wqkv_ref, bqkv_ref, qkv_ref):
    # x block: (1, C, Ts) f32 in the native channel-major layout.
    xt = jnp.transpose(x_ref[0], (1, 0))                    # (Ts, C), XLU
    # GroupNorm folded into per-channel scale/shift rows (computed per sample
    # in a tiny XLA pre-pass): xn = x * (rstd*gamma) + (beta - mean*rstd*gamma).
    xn = xt * scale_ref[0] + shift_ref[0]                   # (Ts, C) f32
    # Fused QKV projection: bf16 operands, f32 accumulation (native MXU rate).
    # The 1/sqrt(C) attention scale is pre-folded into the Q columns/bias.
    qkv = jnp.dot(xn.astype(jnp.bfloat16), wqkv_ref[...],
                  preferred_element_type=jnp.float32) + bqkv_ref[...]
    qkv_ref[0] = qkv.astype(qkv_ref.dtype)                  # (Ts, 3C) bf16


# ---------------------------------------------------------------------------
# Kernel 2: flash-style attention + out-projection + residual (native layout)
# ---------------------------------------------------------------------------
def _flash_attn_kernel(q_ref, k_ref, v_ref, wo_ref, bo_ref, xres_ref, o_ref,
                       m_sc, l_sc, acc_sc):
    ki = pl.program_id(2)

    @pl.when(ki == 0)
    def _():
        m_sc[...] = jnp.full(m_sc.shape, -jnp.inf, dtype=m_sc.dtype)
        l_sc[...] = jnp.zeros(l_sc.shape, dtype=l_sc.dtype)
        acc_sc[...] = jnp.zeros(acc_sc.shape, dtype=acc_sc.dtype)

    q = q_ref[0]          # (Tq,  C) bf16, already scaled by 1/sqrt(C)
    k = k_ref[0]          # (Tkv, C) bf16
    v = v_ref[0]          # (Tkv, C) bf16

    # Scores: contract last dims directly on the MXU -- no explicit k.T.
    s = jax.lax.dot_general(q, k, (((1,), (1,)), ((), ())),
                            preferred_element_type=jnp.float32)   # (Tq, Tkv) f32

    m_prev = m_sc[...]
    m_new = jnp.maximum(m_prev, jnp.max(s, axis=-1, keepdims=True))
    alpha = jnp.exp(m_prev - m_new)
    p = jnp.exp(s - m_new)                                         # f32 softmax math
    l_sc[...] = alpha * l_sc[...] + jnp.sum(p, axis=-1, keepdims=True)
    acc_sc[...] = alpha * acc_sc[...] + jax.lax.dot_general(
        p.astype(jnp.bfloat16), v, (((1,), (0,)), ((), ())),
        preferred_element_type=jnp.float32)                        # bf16 in, f32 acc
    m_sc[...] = m_new

    @pl.when(ki == pl.num_programs(2) - 1)
    def _():
        ctx = acc_sc[...] * pl.reciprocal(l_sc[...], approx=False)  # (Tq, C) f32
        out = jnp.dot(ctx.astype(jnp.bfloat16), wo_ref[...],
                      preferred_element_type=jnp.float32) + bo_ref[...]
        # Fuse the NSC -> NCS transpose here (XLU is idle in the finalize) and
        # add the residual in its native channel-major layout.
        out_t = jnp.transpose(out, (1, 0))                          # (C, Tq)
        o_ref[0] = (out_t + xres_ref[0]).astype(o_ref.dtype)


# ---------------------------------------------------------------------------
# pallas_call wrappers
# ---------------------------------------------------------------------------
def _groupnorm_qkv(x_ncs, scale_c, shift_c, w_qkv, b_qkv, ts, vmem_limit):
    N, C, S = x_ncs.shape
    C3 = w_qkv.shape[1]
    return pl.pallas_call(
        _gn_qkv_kernel,
        out_shape=jax.ShapeDtypeStruct((N, S, C3), jnp.bfloat16),
        grid_spec=pltpu.PrefetchScalarGridSpec(
            num_scalar_prefetch=0,
            grid=(N, S // ts),
            in_specs=[
                pl.BlockSpec((1, C, ts), lambda n, si: (n, 0, si)),  # x (native NCS)
                pl.BlockSpec((1, 1, C), lambda n, si: (n, 0, 0)),    # rstd*gamma
                pl.BlockSpec((1, 1, C), lambda n, si: (n, 0, 0)),    # beta - mean*rstd*gamma
                pl.BlockSpec((C, C3), lambda n, si: (0, 0)),         # W_qkv (bf16)
                pl.BlockSpec((1, C3), lambda n, si: (0, 0)),         # b_qkv (f32)
            ],
            out_specs=pl.BlockSpec((1, ts, C3), lambda n, si: (n, si, 0)),
        ),
        compiler_params=pltpu.CompilerParams(
            dimension_semantics=("parallel", "parallel"),
            vmem_limit_bytes=vmem_limit),
    )(x_ncs, scale_c, shift_c, w_qkv, b_qkv)


def _flash_attention(qkv, x_ncs, wo, bo, tq, tkv, vmem_limit):
    N, C, S = x_ncs.shape
    nq, nkv = S // tq, S // tkv
    return pl.pallas_call(
        _flash_attn_kernel,
        out_shape=jax.ShapeDtypeStruct((N, C, S), x_ncs.dtype),
        grid_spec=pltpu.PrefetchScalarGridSpec(
            num_scalar_prefetch=0,
            grid=(N, nq, nkv),
            in_specs=[
                # q / k / v are lane-aligned C-wide slices of the fused qkv tensor.
                pl.BlockSpec((1, tq, C), lambda n, qi, ki: (n, qi, 0)),   # Q
                pl.BlockSpec((1, tkv, C), lambda n, qi, ki: (n, ki, 1)),  # K
                pl.BlockSpec((1, tkv, C), lambda n, qi, ki: (n, ki, 2)),  # V
                pl.BlockSpec((C, C), lambda n, qi, ki: (0, 0)),           # W_out (bf16)
                pl.BlockSpec((1, C), lambda n, qi, ki: (0, 0)),           # b_out (f32)
                pl.BlockSpec((1, C, tq), lambda n, qi, ki: (n, 0, qi)),   # residual (NCS)
            ],
            out_specs=pl.BlockSpec((1, C, tq), lambda n, qi, ki: (n, 0, qi)),
            scratch_shapes=[
                pltpu.VMEM((tq, 1), jnp.float32),   # running max m
                pltpu.VMEM((tq, 1), jnp.float32),   # running sum l
                pltpu.VMEM((tq, C), jnp.float32),   # context accumulator
            ],
        ),
        compiler_params=pltpu.CompilerParams(
            dimension_semantics=("parallel", "parallel", "arbitrary"),
            vmem_limit_bytes=vmem_limit),
    )(qkv, qkv, qkv, wo, bo, x_ncs)


# ---------------------------------------------------------------------------
# Public wrapper
# ---------------------------------------------------------------------------
def vae_attention_block(x_nchw, params, num_groups=32, tq=None, tkv=None, ts=None):
    """x_nchw: (N, C, H, W) float32. Returns (N, C, H, W)."""
    N, C, H, W = x_nchw.shape
    S = H * W
    assert C % num_groups == 0

    vmem_limit = _vmem_limit_bytes()

    # Flash tile defaults: tq=512; tkv as large as a generation-aware VMEM
    # budget allows (tkv=S on 128 MiB parts for S<=~4096, capped on v7x's 64 MiB).
    if tq is None:
        tq = _pick_tile(S, 512)
    if tkv is None:
        kv_budget = _vmem_capacity_bytes() // 3
        tkv_cap = max(128, kv_budget // (8 * C + 4 * tq))
        tkv = _pick_tile(S, tkv_cap)
    if ts is None:
        ts = _pick_tile(S, 512)
    assert S % tq == 0 and S % tkv == 0 and S % ts == 0, \
        "S must be divisible by the tile sizes"

    # Native channel-major layout (free reshape of NCHW). Both kernels read /
    # write this layout directly, so the wrapper has no HBM transpose round trip.
    x_ncs = x_nchw.reshape(N, C, S).astype(jnp.float32)

    # --- GroupNorm stats pre-pass (tiny XLA reduction, per the perf review) --
    cg = C // num_groups
    gamma = params["gamma"].astype(jnp.float32)
    beta = params["beta"].astype(jnp.float32)
    xg = x_ncs.reshape(N, num_groups, cg * S)
    mean_g = jnp.mean(xg, axis=-1)                                # (N, G)
    rstd_g = jax.lax.rsqrt(jnp.var(xg, axis=-1) + EPS)            # (N, G)
    mean_c = jnp.repeat(mean_g, cg, axis=-1)                      # (N, C)
    rstd_c = jnp.repeat(rstd_g, cg, axis=-1)                      # (N, C)
    scale_c = (rstd_c * gamma[None, :]).reshape(N, 1, C)
    shift_c = (beta[None, :] - mean_c * rstd_c * gamma[None, :]).reshape(N, 1, C)

    # --- Fused QKV / output weights (bf16 MXU operands; scale folded into Q) --
    scale = 1.0 / math.sqrt(C)                  # single head -> d_head = C
    w_in = params["w_in"].astype(jnp.float32)   # (3C, C)
    b_in = params["b_in"].astype(jnp.float32)   # (3C,)
    w_qkv = jnp.concatenate(
        [w_in[0:C].T * scale, w_in[C:2 * C].T, w_in[2 * C:3 * C].T],
        axis=1).astype(jnp.bfloat16)                               # (C, 3C) bf16
    b_qkv = jnp.concatenate(
        [b_in[0:C] * scale, b_in[C:2 * C], b_in[2 * C:3 * C]]).reshape(1, 3 * C)
    wo = params["w_out"].astype(jnp.float32).T.astype(jnp.bfloat16)  # (C, C) bf16
    bo = params["b_out"].astype(jnp.float32).reshape(1, C)

    qkv = _groupnorm_qkv(x_ncs, scale_c, shift_c, w_qkv, b_qkv, ts, vmem_limit)
    out_ncs = _flash_attention(qkv, x_ncs, wo, bo, tq, tkv, vmem_limit)
    return out_ncs.reshape(N, C, H, W)


# ---------------------------------------------------------------------------
# Pure-JAX (f32) reference matching the PyTorch module
# ---------------------------------------------------------------------------
def reference(x_nchw, params, num_groups=32):
    N, C, H, W = x_nchw.shape
    xg = x_nchw.reshape(N, num_groups, C // num_groups, H, W)
    mean = jnp.mean(xg, axis=(2, 3, 4), keepdims=True)
    var = jnp.var(xg, axis=(2, 3, 4), keepdims=True)
    xn = ((xg - mean) / jnp.sqrt(var + EPS)).reshape(N, C, H, W)
    xn = xn * params["gamma"][None, :, None, None] + params["beta"][None, :, None, None]
    t = jnp.transpose(xn.reshape(N, C, H * W), (0, 2, 1))
    qkv = jnp.einsum("nsc,dc->nsd", t, params["w_in"]) + params["b_in"]
    q, k, v = jnp.split(qkv, 3, axis=-1)
    w = jnp.einsum("nsc,ntc->nst", q, k) / math.sqrt(C)
    w = jax.nn.softmax(w, axis=-1)
    o = jnp.einsum("nst,ntc->nsc", w, v)
    o = jnp.einsum("nsc,dc->nsd", o, params["w_out"]) + params["b_out"]
    o = jnp.transpose(o, (0, 2, 1)).reshape(N, C, H, W)
    return o + x_nchw


if __name__ == "__main__":
    # Small shapes consistent with the module: GroupNorm(32, C) needs C % 32 == 0;
    # C=128 keeps every block lane-dense.  S=256 with tq=128, tkv=64, ts=128
    # exercises multi-tile online softmax (nkv=4), multiple q tiles (nq=2) and
    # the S-tiled GroupNorm+QKV kernel (2 token tiles per sample).
    N, C, H, W = 2, 128, 16, 16

    key = jax.random.PRNGKey(0)
    k_x, k_g, k_b, k_wi, k_bi, k_wo, k_bo = jax.random.split(key, 7)

    x = jax.random.normal(k_x, (N, C, H, W), dtype=jnp.float32)

    scale = 1.0 / math.sqrt(C)
    params = {
        "gamma": 1.0 + 0.1 * jax.random.normal(k_g, (C,), dtype=jnp.float32),
        "beta": 0.1 * jax.random.normal(k_b, (C,), dtype=jnp.float32),
        # SelfAttention(1, C): in_proj Linear(C, 3C), out_proj Linear(C, C)
        "w_in": scale * jax.random.normal(k_wi, (3 * C, C), dtype=jnp.float32),
        "b_in": 0.1 * jax.random.normal(k_bi, (3 * C,), dtype=jnp.float32),
        "w_out": scale * jax.random.normal(k_wo, (C, C), dtype=jnp.float32),
        "b_out": 0.1 * jax.random.normal(k_bo, (C,), dtype=jnp.float32),
    }

    out = jax.block_until_ready(vae_attention_block(x, params, tq=128, tkv=64, ts=128))
    ref = jax.block_until_ready(reference(x, params))

    assert out.shape == (N, C, H, W)
    # bf16 MXU operands (xn, W_qkv, q/k/v, attention probs, ctx, W_out) vs an
    # all-f32 reference: GroupNorm stats, softmax and accumulation stay in f32,
    # so the tolerance only needs to absorb the bf16 rounding of the matmul path.
    err = float(jnp.max(jnp.abs(out - ref)))
    assert jnp.allclose(out, ref, atol=5e-2, rtol=5e-2), err
    print("KERNEL_OK")
</pallas_src>

<mosaic_0001>
module attributes {stable_mosaic.version = 11 : i64} {
  func.func @_gn_qkv_kernel(%arg0: i32, %arg1: i32, %arg2: memref<1x128x128xf32, #tpu.memory_space<vmem>>, %arg3: memref<1x1x128xf32, #tpu.memory_space<vmem>>, %arg4: memref<1x1x128xf32, #tpu.memory_space<vmem>>, %arg5: memref<128x384xbf16, #tpu.memory_space<vmem>>, %arg6: memref<1x384xf32, #tpu.memory_space<vmem>>, %arg7: memref<1x128x384xbf16, #tpu.memory_space<vmem>>) attributes {dimension_semantics = [#tpu.dimension_semantics<parallel>, #tpu.dimension_semantics<parallel>], iteration_bounds = array<i64: 2, 2>, scalar_prefetch = 0 : i64, scratch_operands = 0 : i64, tpu.core_type = #tpu.core_type<tc>, window_params = [{transform_indices = @transform_0, window_bounds = array<i64: 1, 128, 128>}, {transform_indices = @transform_1, window_bounds = array<i64: 1, 1, 128>}, {transform_indices = @transform_2, window_bounds = array<i64: 1, 1, 128>}, {pipeline_mode = #tpu.pipeline_mode<synchronous>, transform_indices = @transform_3, window_bounds = array<i64: 128, 384>}, {pipeline_mode = #tpu.pipeline_mode<synchronous>, transform_indices = @transform_4, window_bounds = array<i64: 1, 384>}, {transform_indices = @transform_5, window_bounds = array<i64: 1, 128, 384>}]} {
    %c0 = arith.constant 0 : index
    %c0_0 = arith.constant 0 : index
    %c0_1 = arith.constant 0 : index
    %0 = vector.load %arg2[%c0, %c0_0, %c0_1] : memref<1x128x128xf32, #tpu.memory_space<vmem>>, vector<1x128x128xf32>
    %1 = vector.shape_cast %0 : vector<1x128x128xf32> to vector<128x128xf32>
    %2 = tpu.transpose %1, [1, 0] : vector<128x128xf32> -> vector<128x128xf32>
    %c0_2 = arith.constant 0 : index
    %c0_3 = arith.constant 0 : index
    %c0_4 = arith.constant 0 : index
    %3 = vector.load %arg3[%c0_2, %c0_3, %c0_4] : memref<1x1x128xf32, #tpu.memory_space<vmem>>, vector<1x1x128xf32>
    %4 = vector.shape_cast %3 : vector<1x1x128xf32> to vector<1x128xf32>
    %5 = vector.broadcast %4 : vector<1x128xf32> to vector<128x128xf32>
    %6 = arith.mulf %2, %5 : vector<128x128xf32>
    %c0_5 = arith.constant 0 : index
    %c0_6 = arith.constant 0 : index
    %c0_7 = arith.constant 0 : index
    %7 = vector.load %arg4[%c0_5, %c0_6, %c0_7] : memref<1x1x128xf32, #tpu.memory_space<vmem>>, vector<1x1x128xf32>
    %8 = vector.shape_cast %7 : vector<1x1x128xf32> to vector<1x128xf32>
    %9 = vector.broadcast %8 : vector<1x128xf32> to vector<128x128xf32>
    %10 = arith.addf %6, %9 : vector<128x128xf32>
    %11 = arith.truncf %10 : vector<128x128xf32> to vector<128x128xbf16>
    %c0_8 = arith.constant 0 : index
    %c0_9 = arith.constant 0 : index
    %12 = vector.load %arg5[%c0_8, %c0_9] : memref<128x384xbf16, #tpu.memory_space<vmem>>, vector<128x384xbf16>
    %cst = arith.constant dense<0.000000e+00> : vector<128x384xf32>
    %13 = tpu.matmul %11, %12, %cst {dimension_numbers = #tpu.dot_dimension_numbers<[1], [0], [0], [1], [0, 0, 1, 1], [], []>} : vector<128x128xbf16>, vector<128x384xbf16>, vector<128x384xf32> -> vector<128x384xf32>
    %c0_10 = arith.constant 0 : index
    %c0_11 = arith.constant 0 : index
    %14 = vector.load %arg6[%c0_10, %c0_11] : memref<1x384xf32, #tpu.memory_space<vmem>>, vector<1x384xf32>
    %15 = vector.broadcast %14 : vector<1x384xf32> to vector<128x384xf32>
    %16 = arith.addf %13, %15 : vector<128x384xf32>
    %17 = arith.truncf %16 : vector<128x384xf32> to vector<128x384xbf16>
    %c0_12 = arith.constant 0 : index
    %c0_13 = arith.constant 0 : index
    %c0_14 = arith.constant 0 : index
    %18 = vector.load %arg7[%c0_12, %c0_13, %c0_14] : memref<1x128x384xbf16, #tpu.memory_space<vmem>>, vector<1x128x384xbf16>
    %19 = vector.shape_cast %18 : vector<1x128x384xbf16> to vector<128x384xbf16>
    %20 = vector.shape_cast %17 : vector<128x384xbf16> to vector<1x128x384xbf16>
    tpu.vector_store %arg7[%c0_12, %c0_13, %c0_14], %20 {strides = array<i32>} : memref<1x128x384xbf16, #tpu.memory_space<vmem>>, vector<1x128x384xbf16>,
    return
  }
  func.func @transform_0(%arg0: i32, %arg1: i32) -> (i32, i32, i32) {
    %c0_i32 = arith.constant 0 : i32
    %c0_i32_0 = arith.constant 0 : i32
    return %arg0, %c0_i32, %arg1 : i32, i32, i32
  }
  func.func @transform_1(%arg0: i32, %arg1: i32) -> (i32, i32, i32) {
    %c0_i32 = arith.constant 0 : i32
    %c0_i32_0 = arith.constant 0 : i32
    %c0_i32_1 = arith.constant 0 : i32
    return %arg0, %c0_i32, %c0_i32_0 : i32, i32, i32
  }
  func.func @transform_2(%arg0: i32, %arg1: i32) -> (i32, i32, i32) {
    %c0_i32 = arith.constant 0 : i32
    %c0_i32_0 = arith.constant 0 : i32
    %c0_i32_1 = arith.constant 0 : i32
    return %arg0, %c0_i32, %c0_i32_0 : i32, i32, i32
  }
  func.func @transform_3(%arg0: i32, %arg1: i32) -> (i32, i32) {
    %c0_i32 = arith.constant 0 : i32
    %c0_i32_0 = arith.constant 0 : i32
    %c0_i32_1 = arith.constant 0 : i32
    return %c0_i32, %c0_i32_0 : i32, i32
  }
  func.func @transform_4(%arg0: i32, %arg1: i32) -> (i32, i32) {
    %c0_i32 = arith.constant 0 : i32
    %c0_i32_0 = arith.constant 0 : i32
    %c0_i32_1 = arith.constant 0 : i32
    return %c0_i32, %c0_i32_0 : i32, i32
  }
  func.func @transform_5(%arg0: i32, %arg1: i32) -> (i32, i32, i32) {
    %c0_i32 = arith.constant 0 : i32
    %c0_i32_0 = arith.constant 0 : i32
    return %arg0, %arg1, %c0_i32 : i32, i32, i32
  }
}

</mosaic_0001>

<bundles_post_ra>
// kernel: tpu_custom_call.1
= control target key start
LH: loop header
LB: loop body
LE: loop exit
PB: predicated region body
PF: predicated region fallthrough
CT: control target
= control target key end

     0   :  { %s2410_s0 = inlined_call_operand.hbm [shape: f32[2,128,256], index: 0, kind: input, shape index: {}]   ;;  %s2411_s1 = inlined_call_operand.hbm [shape: f32[2,1,128], index: 1, kind: input, shape index: {}]   ;;  %s2412_s2 = inlined_call_operand.hbm [shape: f32[2,1,128], index: 2, kind: input, shape index: {}]   ;;  %s2413_s3 = inlined_call_operand.hbm [shape: bf16[128,384], index: 3, kind: input, shape index: {}]   ;;  %s2414_s4 = inlined_call_operand.hbm [shape: f32[1,384], index: 4, kind: input, shape index: {}]   ;;  %s2415_s5 = inlined_call_operand.hbm [shape: bf16[2,256,384], index: 5, kind: output, shape index: {}]  }
   0x1   :  { %2434 = sst [smem:[#allocation25_spill]] %s2410_s0 }
   0x2   :  { %2435 = sst [smem:[#allocation26_spill]] %s2411_s1 }
   0x3   :  { %2436 = sst [smem:[#allocation27_spill]] %s2413_s3 }
   0x4   :  { %2437 = sst [smem:[#allocation28_spill]] %s2415_s5 }
   0x5   :  { %10 = vsyncpa [#allocation3], 0 }
   0x6   :  { %12 = vsyncpa [#allocation3 + $0x1], 0 }
   0x7   :  { %13 = vsyncpa [#allocation6], 0 }
   0x8   :  { %15 = vsyncpa [#allocation6 + $0x1], 0 }
   0x9   :  { %16 = vsyncpa [#allocation9], 0 }
   0xa   :  { %17 = vsyncpa [#allocation4], 0 }
   0xb   :  { %19 = vsyncpa [#allocation4 + $0x1], 0  ;;  %s1853_s18 = smov 0   ;;  %s1855_s19 = smov 0  }
   0xc   :  { %s1857_s20 = smov 0   ;;  %s1859_s21 = smov 0  }
   0xd   :  { %s1861_s22 = smov 0   ;;  %s1863_s23 = smov 0  }
   0xe   :  { %s1865_s24 = smov 0   ;;  %s1867_s25 = smov 0  }
   0xf   :  { %s1869_s26 = smov 0   ;;  %s1871_s27 = smov 0  }
  0x10   :  { %s1873_s28 = smov 0  }
  0x11 LB: > { %2438 = sst [smem:[#allocation16_spill]] %s1779_s21  ;;  %s1909_s29 = sadd.s32 4294967295, %s1807_s28   ;;  %s1807_s28 = sphi %s1873_s28, %s25_s28   ;;  %s1803_s27 = sphi %s1871_s27, %s2495_s27   ;;  %s1799_s26 = sphi %s1869_s26, %s2494_s26   ;;  %s1795_s25 = sphi %s1867_s25, %s2493_s25   ;;  %s1791_s24 = sphi %s1865_s24, %s2492_s24   ;;  %s1787_s23 = sphi %s1863_s23, %s2491_s23   ;;  %s1783_s22 = sphi %s1861_s22, %s2490_s22   ;;  %s1779_s21 = sphi %s1859_s21, %s2489_s21   ;;  %s1775_s20 = sphi %s1857_s20, %s2488_s20   ;;  %s1771_s19 = sphi %s1855_s19, %s2487_s19   ;;  %s1767_s18 = sphi %s1853_s18, %s2486_s18  }
  0x12   : > { %2439 = sst [smem:[#allocation17_spill]] %s1791_s24  ;;  %s1198_s30 = sadd.s32 4294967294, %s1807_s28  }
  0x13   : > { %2440 = sst [smem:[#allocation18_spill]] %s1795_s25  ;;  %p59_p0 = scmp.ne.s32.totalorder %s1783_s22, %s1779_s21 }
  0x14   : > { %p2416_p1 = scmp.eq.s32.totalorder %s1909_s29, 0  ;;  %p185_p3 = scmp.eq.s32.totalorder %s1198_s30, 3 }
  0x15   : > { %p1199_p5 = scmp.ge.s32.totalorder %s1807_s28, 1  ;;  %p192_p7 = scmp.lt.s32.totalorder %s1807_s28, 5 }
  0x16   : > { %p1918_p4 = por %p2416_p1, %p59_p0  ;;  %p1923_p6 = por %p185_p3, %p59_p0 }
  0x17   : > { %p1928_p8 = pnand %p1199_p5, %p192_p7  ;;  %s1809_s9 = smov [#allocation8]  }
  0x18   : > { %s2441_s6 = scalar_select %p1918_p4, 1, 0 }
  0x19   : > { %s2442_s7 = scalar_select %p1923_p6, 1, 0 }
  0x1a   : > { %s2444_s8 = scalar_select %p1928_p8, 1, 0 }
  0x1b   : > { %2443 = sst [smem:[#allocation19_spill]] %s2442_s7  ;;  %s204_s10 = sshll.u32 %s1809_s9, 4  ;;  %s205_s10 = int_to_ptr.vmem [resolvable:$true] %s204_s10 }
  0x1c   : > { %p1374_p9 = pneg %p1928_p8  ;;  %s2446_s3 = sld [smem:[#allocation27_spill]] }
  0x1e   : > { %p1936_p10 = pnand %p1374_p9, %p2416_p1 }
  0x20   : > { %p2427_p12 = pneg %p1936_p10 }
  0x22   : > { %s1531_s14 = scalar_lea.hbm %s2446_s3, 3072 }
  0x23   : > { %p1532_p11 = scmp.ne.s32.totalorder %s2446_s3, %s1531_s14  ;;  %p1538_p3 = scmp.lt.u32.totalorder %s1531_s14, %s2446_s3 }
  0x25   : > { %p1534_p13 = pnand %p2427_p12, %p1532_p11 }
  0x27   : > { %p1535_p0 = pneg %p1534_p13 }
  0x29   : > { %p1540_p5 = pnand %p1538_p3, %p1535_p0 }
  0x2b   : > { %1543 = shalt.err (!%p1540_p5)
}
  0x2c   : > { %s1544_s9 = scalar_lea.vmem %s205_s10, 3072  ;;  %p1552_p2 = scmp.lt.s32.totalorder %s205_s10, %s205_s10 }
  0x2d   : > { %p1545_p7 = scmp.ne.s32.totalorder %s205_s10, %s1544_s9  ;;  %p1553_p6 = scmp.lt.s32.totalorder %s1544_s9, %s1544_s9 }
  0x2f   : > { %p1547_p9 = pnand %p1545_p7, %p2427_p12  ;;  %p1554_p4 = por %p1553_p6, %p1552_p2 }
  0x31   : > { %p1548_p1 = pneg %p1547_p9 }
  0x33   : > { %p1555_p8 = pnand %p1554_p4, %p1548_p1 }
  0x35   : > { %1558 = shalt.err (!%p1555_p8)
}
  0x36   : > { %s1810_s12 = smov 192   ;;  %s1811_s13 = smov 12  }
  0x37   : > { %1377 = dma.hbm_to_vmem [thread:$0]  (!%p1936_p10), %s2446_s3, 3072, %s205_s10, [#allocation9], %s1810_s12, %s1810_s12, %s1811_s13  }
  0x38   : > { %s34_s16 = sadd.s32 1, %s1799_s26  ;;  %s37_s17 = sadd.s32 1, %s1803_s27 }
  0x39   : > { %p35_p1 = scmp.ge.s32.totalorder %s34_s16, 2  ;;  %s46_s30 = sadd.s32 1, %s1787_s23 }
  0x3a   : > { %p53_p2 = scmp.ne.s32.totalorder %s1787_s23, %s1783_s22  ;;  %p54_p4 = scmp.eq.s32.totalorder %s1807_s28, 0 }
  0x3b   : > { %s2497_s16 = smov (%p35_p1, %s34_s16), 0  ;;  %s2499_s17 = smov (!%p35_p1, %s37_s17), %s1803_s27 }
  0x3c   : > { %2447 = sst [smem:[#allocation20_spill]] %s2497_s16  ;;  %s42_s9 = ssub.s32 %s1799_s26, %s2497_s16 }
  0x3d   : > { %p39_p6 = scmp.ge.s32.totalorder %s2499_s17, 2  ;;  %s72_s10 = sadd.s32 1, %s1775_s20 }
  0x3e   : > { %p1977_p8 = por %p54_p4, %p53_p2  ;;  %p79_p11 = scmp.ne.s32.totalorder %s1775_s20, %s1771_s19 }
  0x3f   : > { %s2501_s17 = smov (%p39_p6, %s2499_s17), 0  ;;  %p85_p0 = scmp.ne.s32.totalorder %s1771_s19, %s1767_s18 }
  0x40   : > { %2449 = sst [smem:[#allocation21_spill]] %s2501_s17  ;;  %p1985_p13 = por %p79_p11, %p54_p4 }
  0x41   : > { %s41_s14 = ssub.s32 %s1803_s27, %s2501_s17  ;;  %p2451_p3 = scmp.eq.s32.totalorder %s1909_s29, 3 }
  0x42   : > { %s43_s3 = sor.u32 %s42_s9, %s41_s14  ;;  %p70_p7 = scmp.eq.s32.totalorder %s41_s14, 0 }
  0x43   : > { %p1998_p5 = por %p2451_p3, %p53_p2  ;;  %p44_p9 = scmp.eq.s32.totalorder %s43_s3, 0 }
  0x44   : > { %p2454_p1 = scmp.eq.s32.totalorder %s1909_s29, 0  ;;  %p1397_p4 = scmp.lt.s32.totalorder %s1807_s28, 4 }
  0x45   : > { %s2452_s15 = scalar_select %p1998_p5, 1, 0 }
  0x46   : > { %p2004_p6 = por %p85_p0, %p2454_p1  ;;  %s251_s18 = sand.u32 1, %s1807_s28  }
  0x47   : > { %2453 = sst [smem:[#allocation22_spill]] %s2452_s15  ;;  %s2426_s17 = sand.u32 1, %s1775_s20  }
  0x48   : > { %s2455_s16 = scalar_select %p2004_p6, 1, 0 }
  0x49   : > { %s2009_s7 = scalar_select %p70_p7, %s1775_s20, %s72_s10  }
  0x4a   : > { %s2012_s21 = scalar_select %p44_p9, %s1787_s23, %s46_s30  }
  0x4b   : > { %2456 = sst [smem:[#allocation23_spill]] %s2009_s7  ;;  %p2019_p2 = pnand %p1397_p4, %p1977_p8 }
  0x4c   : > { %2457 = sst [smem:[#allocation24_spill]] %s2012_s21  ;;  %s1206_s9 = sshll.u32 %s1803_s27, 4 }
  0x4d   : > { %s2458_s5 = scalar_select %p2019_p2, 1, 0 }
  0x4e   : > { %s254_s3 = scalar_lea.vmem [#allocation5], %s2426_s17  ;;  %s2459_s1 = sld [smem:[#allocation26_spill]] }
  0x4f   : > { %s261_s14 = sshll.u32 %s254_s3, 4  ;;  %p2035_p8 = pnand %p1397_p4, %p1985_p13  ;;  %s2031_s14 = int_to_ptr.vmem [resolvable:$true] %s261_s14 }
  0x50   : > { %s2042_s3 = scalar_lea.hbm %s2412_s2, %s1206_s9  ;;  %s2044_s25 = scalar_lea.sflag [#allocation6], %s251_s18 }
  0x51   : > { %s2460_s30 = scalar_select %p2035_p8, 1, 0 }
  0x52   : > { %p2431_p0 = pneg %p2035_p8 }
  0x54   : > { %s2029_s24 = scalar_lea.hbm %s2459_s1, %s1206_s9  ;;  %s1564_s21 = scalar_lea.hbm %s2459_s1, 32 }
  0x55   : > { %s1559_s15 = scalar_lea.hbm %s2029_s24, 16  ;;  %p1565_p7 = scmp.lt.u32.totalorder %s2029_s24, %s2459_s1 }
  0x56   : > { %p1560_p11 = scmp.ne.s32.totalorder %s2029_s24, %s1559_s15  ;;  %p1566_p9 = scmp.lt.u32.totalorder %s1564_s21, %s1559_s15 }
  0x57   : > { %p1568_p4 = scmp.lt.u32.totalorder %s1559_s15, %s2029_s24 }
  0x58   : > { %p1562_p3 = pnand %p2431_p0, %p1560_p11  ;;  %p1567_p1 = por %p1566_p9, %p1565_p7 }
  0x5a   : > { %p1563_p13 = pneg %p1562_p3  ;;  %p1569_p12 = por %p1568_p4, %p1567_p1 }
  0x5c   : > { %p1570_p5 = pnand %p1569_p12, %p1563_p13 }
  0x5e   : > { %1573 = shalt.err (!%p1570_p5)
}
  0x5f   : > { %s1574_s18 = scalar_lea.vmem %s2031_s14, 16  ;;  %s1812_s17 = smov [#allocation5]  }
  0x60   : > { %p1575_p11 = scmp.ne.s32.totalorder %s2031_s14, %s1574_s18  ;;  %s1579_s9 = sshll.u32 %s1812_s17, 4  ;;  %s1580_s9 = int_to_ptr.vmem [resolvable:$false] %s1579_s9 }
  0x61   : > { %s1581_s7 = scalar_lea.vmem %s1580_s9, 32  ;;  %p1582_p2 = scmp.lt.s32.totalorder %s2031_s14, %s1580_s9 }
  0x62   : > { %p1577_p3 = pnand %p1575_p11, %p2431_p0  ;;  %p1583_p7 = scmp.lt.s32.totalorder %s1581_s7, %s1574_s18 }
  0x64   : > { %p1578_p6 = pneg %p1577_p3  ;;  %p1584_p9 = por %p1583_p7, %p1582_p2 }
  0x66   : > { %p1585_p1 = pnand %p1584_p9, %p1578_p6 }
  0x68   : > { %1588 = shalt.err (!%p1585_p1)
}
  0x69   : > { %1387 = dma.hbm_to_vmem [thread:$0]  (!%p2035_p8), %s2029_s24, 16, %s2031_s14, %s2044_s25  }
  0x6a   : > { %s1813_s21 = smov [#allocation10]   ;;  %s229_s15 = sand.u32 1, %s1787_s23  }
  0x6b   : > { %s218_s12 = sshll.u32 %s1813_s21, 4  ;;  %s1589_s17 = scalar_lea.hbm %s2414_s4, 48  ;;  %s219_s12 = int_to_ptr.vmem [resolvable:$true] %s218_s12 }
  0x6c   : > { %p1590_p12 = scmp.ne.s32.totalorder %s2414_s4, %s1589_s17  ;;  %p2461_p5 = pneg %p1936_p10 }
  0x6d   : > { %p1596_p13 = scmp.lt.u32.totalorder %s1589_s17, %s2414_s4 }
  0x6e   : > { %p1592_p6 = pnand %p1590_p12, %p2461_p5 }
  0x70   : > { %p1593_p2 = pneg %p1592_p6 }
  0x72   : > { %p1598_p4 = pnand %p1596_p13, %p1593_p2 }
  0x74   : > { %1601 = shalt.err (!%p1598_p4)
}
  0x75   : > { %s1602_s24 = scalar_lea.vmem %s219_s12, 48  ;;  %p2462_p3 = pmov %p2461_p5 }
  0x76   : > { %p1603_p11 = scmp.ne.s32.totalorder %s219_s12, %s1602_s24  ;;  %s1609_s14 = scalar_lea.vmem %s219_s12, 64 }
  0x77   : > { %p1610_p1 = scmp.lt.s32.totalorder %s219_s12, %s219_s12  ;;  %p1611_p0 = scmp.lt.s32.totalorder %s1609_s14, %s1602_s24 }
  0x78   : > { %p1605_p7 = pnand %p1603_p11, %p2462_p3 }
  0x79   : > { %p1612_p8 = por %p1611_p0, %p1610_p1 }
  0x7a   : > { %p1606_p9 = pneg %p1605_p7 }
  0x7c   : > { %p1613_p5 = pnand %p1612_p8, %p1606_p9 }
  0x7e   : > { %1616 = shalt.err (!%p1613_p5)
}
  0x7f   : > { %1380 = dma.hbm_to_vmem [thread:$0]  (!%p1936_p10), %s2414_s4, 48, %s219_s12, [#allocation9]  }
  0x80   : > { %s1203_s13 = sshll.u32 %s229_s15, 7  ;;  %s1204_s10 = sshll.u32 %s1803_s27, 5 }
  0x81   : > { %s238_s17 = sadd.s32 %s1799_s26, %s1204_s10  ;;  %s233_s9 = scalar_lea.vmem [#allocation2], %s1203_s13 }
  0x82   : > { %s1205_s18 = sshll.u32 %s238_s17, 7  ;;  %s241_s7 = sshll.u32 %s233_s9, 4  ;;  %s2102_s7 = int_to_ptr.vmem [resolvable:$true] %s241_s7 }
  0x83   : > { %s2463_s0 = sld [smem:[#allocation25_spill]]  ;;  %s2464_s21 = sand.u32 1, %s1775_s20  }
  0x84   : > { %s2106_s12 = scalar_lea.vmem [#allocation7], %s2464_s21  ;;  %s2111_s10 = scalar_lea.sflag [#allocation3], %s229_s15 }
  0x85   : > { %s278_s1 = sshll.u32 %s2106_s12, 4  ;;  %p2465_p8 = scmp.ne.s32.totalorder %s2458_s5, 0  ;;  %s279_s1 = int_to_ptr.vmem [resolvable:$true] %s278_s1 }
  0x87   : > { %p1619_p0 = pneg %p2465_p8 }
  0x89   : > { %s2100_s14 = scalar_lea.hbm %s2463_s0, %s1205_s18  ;;  %s1622_s9 = scalar_lea.hbm %s2463_s0, 8192 }
  0x8a   : > { %s1617_s13 = scalar_lea.hbm %s2100_s14, 2048  ;;  %p1623_p2 = scmp.lt.u32.totalorder %s2100_s14, %s2463_s0 }
  0x8b   : > { %p1618_p10 = scmp.ne.s32.totalorder %s2100_s14, %s1617_s13  ;;  %p1624_p13 = scmp.lt.u32.totalorder %s1622_s9, %s1617_s13 }
  0x8c   : > { %p1626_p11 = scmp.lt.u32.totalorder %s1617_s13, %s2100_s14 }
  0x8d   : > { %p1620_p12 = pnand %p1619_p0, %p1618_p10  ;;  %p1625_p4 = por %p1624_p13, %p1623_p2 }
  0x8f   : > { %p1621_p6 = pneg %p1620_p12  ;;  %p1627_p3 = por %p1626_p11, %p1625_p4 }
  0x91   : > { %p1628_p7 = pnand %p1627_p3, %p1621_p6 }
  0x93   : > { %1631 = shalt.err (!%p1628_p7)
}
  0x94   : > { %s1632_s15 = scalar_lea.vmem %s2102_s7, 2048  ;;  %s1814_s21 = smov [#allocation2]  }
  0x95   : > { %p1633_p9 = scmp.ne.s32.totalorder %s2102_s7, %s1632_s15  ;;  %s1637_s17 = sshll.u32 %s1814_s21, 4  ;;  %s1638_s17 = int_to_ptr.vmem [resolvable:$false] %s1637_s17 }
  0x96   : > { %s1639_s18 = scalar_lea.vmem %s1638_s17, 4096  ;;  %p1640_p10 = scmp.lt.s32.totalorder %s2102_s7, %s1638_s17 }
  0x97   : > { %p1635_p1 = pnand %p1633_p9, %p1619_p0  ;;  %p1641_p12 = scmp.lt.s32.totalorder %s1639_s18, %s1632_s15 }
  0x99   : > { %p1636_p5 = pneg %p1635_p1  ;;  %p1642_p2 = por %p1641_p12, %p1640_p10 }
  0x9b   : > { %p1643_p13 = pnand %p1642_p2, %p1636_p5 }
  0x9d   : > { %1646 = shalt.err (!%p1643_p13)
}
  0x9e   : > { %s1815_s13 = smov 256   ;;  %s1816_s9 = smov 128  }
  0x9f   : > { %s1817_s24 = smov 8   ;;  %s1647_s11 = scalar_lea.hbm %s2042_s3, 16 }
  0xa0   : > { %1384 = dma.hbm_to_vmem [thread:$0]  (!%p2465_p8), %s2100_s14, 2048, %s2102_s7, %s2111_s10, %s1815_s13, %s1816_s9, %s1817_s24  }
  0xa1   : > { %p1648_p0 = scmp.ne.s32.totalorder %s2042_s3, %s1647_s11  ;;  %p2466_p6 = scmp.ne.s32.totalorder %s2460_s30, 0 }
  0xa2   : > { %s1652_s17 = scalar_lea.hbm %s2412_s2, 32  ;;  %p1653_p7 = scmp.lt.u32.totalorder %s2042_s3, %s2412_s2 }
  0xa3   : > { %p2467_p4 = pneg %p2466_p6  ;;  %p1654_p9 = scmp.lt.u32.totalorder %s1652_s17, %s1647_s11 }
  0xa4   : > { %p1656_p5 = scmp.lt.u32.totalorder %s1647_s11, %s2042_s3 }
  0xa5   : > { %p1650_p11 = pnand %p1648_p0, %p2467_p4  ;;  %p1655_p1 = por %p1654_p9, %p1653_p7 }
  0xa7   : > { %p1651_p3 = pneg %p1650_p11  ;;  %p1657_p8 = por %p1656_p5, %p1655_p1 }
  0xa9   : > { %p1658_p10 = pnand %p1657_p8, %p1651_p3 }
  0xab   : > { %1661 = shalt.err (!%p1658_p10)
}
  0xac   : > { %s1662_s5 = scalar_lea.vmem %s279_s1, 16  ;;  %p2468_p2 = pmov %p2467_p4 }
  0xad   : > { %p1663_p12 = scmp.ne.s32.totalorder %s279_s1, %s1662_s5  ;;  %s1818_s7 = smov [#allocation7]  }
  0xae   : > { %s1667_s14 = sshll.u32 %s1818_s7, 4  ;;  %s1668_s14 = int_to_ptr.vmem [resolvable:$false] %s1667_s14 }
  0xaf   : > { %p1665_p13 = pnand %p1663_p12, %p2468_p2  ;;  %s1669_s12 = scalar_lea.vmem %s1668_s14, 32 }
  0xb0   : > { %p1670_p4 = scmp.lt.s32.totalorder %s279_s1, %s1668_s14  ;;  %p1671_p11 = scmp.lt.s32.totalorder %s1669_s12, %s1662_s5 }
  0xb1   : > { %p1666_p0 = pneg %p1665_p13 }
  0xb2   : > { %p1672_p7 = por %p1671_p11, %p1670_p4 }
  0xb4   : > { %p1673_p9 = pnand %p1672_p7, %p1666_p0 }
  0xb6   : > { %1676 = shalt.err (!%p1673_p9)
}
  0xb7   : > { %1390 = dma.hbm_to_vmem [thread:$0]  (!%p2466_p6), %s2042_s3, 16, %s279_s1, %s2044_s25  }
  0xb8   : > { %p2469_p3 = scmp.ne.s32.totalorder %s2444_s8, 0 }
  0xb9   : > { %s2164_s0 = sand.u32 (!%p2469_p3), 1, %s1783_s22   ;;  %p2470_p1 = scmp.ne.s32.totalorder (!%p2469_p3), %s2441_s6, 0 }
  0xba   : > { %287 = sbr.rel (%p2469_p3) target bundleno = 632 (0x278), region = 40  ;;  %s1209_s10 = sshll.u32 (!%p2469_p3), %s2164_s0, 7 }
  0xbb   : > { %s290_s13 = scalar_lea.sflag (!%p2469_p3), [#allocation3], %s2164_s0  ;;  %s2168_s9 = scalar_lea.vmem (!%p2469_p3), [#allocation2], %s1209_s10 }
  0xc1   : > { %1750 = dma.done.wait (%p2470_p1), %s290_s13, 2048  }
  0xc2   : > { %1752 = vsyncadd (%p2470_p1), %s290_s13, 4294965248  ;;  %s298_s8 = sand.u32 1, %s1909_s29   ;;  %s300_s30 = sand.u32 1, %s1771_s19  }
  0xc3   : > { %s299_s3 = scalar_lea.sflag [#allocation6], %s298_s8  ;;  %s2176_s25 = scalar_lea.vmem [#allocation5], %s300_s30 }
  0xc4   : > { %p2471_p6 = scmp.ne.s32.totalorder %s2455_s16, 0 }
  0xc6   : > { %1754 = dma.done.wait (%p2471_p6), %s299_s3, 32  }
  0xc7   : > { %1756 = vsyncadd (%p2471_p6), %s299_s3, 4294967264  ;;  %s2182_s1 = scalar_lea.vmem [#allocation7], %s300_s30  ;;  %p2472_p5 = scmp.eq.s32.totalorder %s1909_s29, 0 }
  0xc9   : > { %1758 = dma.done.wait (%p2472_p5), [#allocation9], 3120   ;;  %p2473_p8 = pmov %p2472_p5 }
  0xca   : > { %v354_v0 = vld [vmem:[%s2168_s9] sm:$0xff]  ;;  %v355_v1 = vld [vmem:[%s2168_s9 + $0x8] sm:$0xff]  ;;  %v356_v2 = vld [vmem:[%s2168_s9 + $0x10] sm:$0xff]  ;;  %v1819_v10 = vmov 0   ;;  %s1355_s29 = smul.u32 192, %s2164_s0  ;;  %s2474_s16 = sld [smem:[#allocation17_spill]] }
  0xcb   : > { %1760 = vsyncadd (%p2473_p8), [#allocation9], 4294964176  ;;  %370 = vxpose.xlu0.b32.start [1/16] %v354_v0, 128  ;;  %v1499_v3 = vld [vmem:[#allocation8 + $0x4] ss:$12 sps:$4 sm:$0xff]   ;;  %v1501_v4 = vld [vmem:[#allocation8] ss:$12 sps:$4 sm:$0xff]   ;;  %665 = vmatprep.mubr.bf16.mxu0 %v1819_v10 }
  0xcc   : > { %v1502_v5 = vld [vmem:[#allocation8 + $0x1c] ss:$12 sps:$4 sm:$0xff]   ;;  %v357_v6 = vld [vmem:[%s2168_s9 + $0x18] sm:$0xff]  ;;  %633 = vmatprep.subr.bf16.mxu0 %v1499_v3  ;;  %v1511_v12 = vld [vmem:[#allocation8 + $0x20] ss:$12 sps:$4 sm:$0xff]   ;;  %s2261_s6 = scalar_lea.vmem [#allocation11], %s1355_s29 }
  0xcd   : > { %v1504_v7 = vld [vmem:[#allocation8 + $0x18] ss:$12 sps:$4 sm:$0xff]   ;;  %634 = vmatpush1.bf16.msra.mxu0 %v1501_v4  ;;  %v1507_v8 = vld [vmem:[#allocation8 + $0x8] ss:$12 sps:$4 sm:$0xff]   ;;  %v358_v11 = vld [vmem:[%s2168_s9 + $0x20] sm:$0xff]  ;;  %s2475_s24 = sld [smem:[#allocation18_spill]] }
  0xce   : > { %635 = vmatprep.subr.bf16.mxu0 %v1502_v5  ;;  %v1505_v9 = vld [vmem:[#allocation8 + $0x34] ss:$12 sps:$4 sm:$0xff]   ;;  %1323 = vmatprep.subr.bf16.mxu1 %v1507_v8  ;;  %v1508_v13 = vld [vmem:[#allocation8 + $0x30] ss:$12 sps:$4 sm:$0xff]   ;;  %v1509_v14 = vld [vmem:[#allocation8 + $0x4c] ss:$12 sps:$4 sm:$0xff]  }
  0xcf   : > { %371 = vxpose.xlu0.b32.cont [2/16] %v355_v1, 128  ;;  %1324 = vmatpush3.bf16.msra.mxu1 %v1507_v8  ;;  %v1515_v15 = vld [vmem:[#allocation8 + $0x38] ss:$12 sps:$4 sm:$0xff]   ;;  %v1512_v17 = vld [vmem:[#allocation8 + $0x48] ss:$12 sps:$4 sm:$0xff]   ;;  %v1519_v19 = vld [vmem:[#allocation8 + $0x50] ss:$12 sps:$4 sm:$0xff]  }
  0xd0   : > { %1325 = vmatprep.subr.bf16.mxu1 %v1511_v12  ;;  %v359_v16 = vld [vmem:[%s2168_s9 + $0x28] sm:$0xff]  ;;  %v360_v20 = vld [vmem:[%s2168_s9 + $0x30] sm:$0xff]  ;;  %v361_v25 = vld [vmem:[%s2168_s9 + $0x38] sm:$0xff]  ;;  %s1356_s11 = smul.u32 48, %s2474_s16  ;;  %s1052_s18 = sshll.u32 %s2261_s6, 4  ;;  %s2342_s18 = int_to_ptr.vmem [resolvable:$true] %s1052_s18 }
  0xd1   : > { %636 = vmatpush1.bf16.msra.mxu0 %v1504_v7  ;;  %v1513_v18 = vld [vmem:[#allocation8 + $0x64] ss:$12 sps:$4 sm:$0xff]   ;;  %v1516_v21 = vld [vmem:[#allocation8 + $0x60] ss:$12 sps:$4 sm:$0xff]   ;;  %v1517_v22 = vld [vmem:[#allocation8 + $0x7c] ss:$12 sps:$4 sm:$0xff]  }
  0xd2   : > { %637 = vmatprep.subr.bf16.mxu0 %v1505_v9  ;;  %v1523_v23 = vld [vmem:[#allocation8 + $0x68] ss:$12 sps:$4 sm:$0xff]   ;;  %v1520_v24 = vld [vmem:[#allocation8 + $0x78] ss:$12 sps:$4 sm:$0xff]   ;;  %v1527_v27 = vld [vmem:[#allocation8 + $0x80] ss:$12 sps:$4 sm:$0xff]  }
  0xd3   : > { %372 = vxpose.xlu0.b32.cont [3/16] %v356_v2, 128  ;;  %1326 = vmatpush3.bf16.msra.mxu1 %v1511_v12  ;;  %v1521_v26 = vld [vmem:[#allocation8 + $0x94] ss:$12 sps:$4 sm:$0xff]   ;;  %v1524_v28 = vld [vmem:[#allocation8 + $0x90] ss:$12 sps:$4 sm:$0xff]   ;;  %v1525_v30 = vld [vmem:[#allocation8 + $0xac] ss:$12 sps:$4 sm:$0xff]  }
  0xd4   : > { %1327 = vmatprep.subr.bf16.mxu1 %v1515_v15  ;;  %v362_v29 = vld [vmem:[%s2168_s9 + $0x40] sm:$0xff]  ;;  %v1529_v31 = vld [vmem:[#allocation8 + $0x98] ss:$12 sps:$4 sm:$0xff]   ;;  %v1528_v32 = vld [vmem:[#allocation8 + $0xa8] ss:$12 sps:$4 sm:$0xff]   ;;  %s1357_s15 = smul.u32 96, %s2475_s24 }
  0xd5   : > { %638 = vmatpush1.bf16.msra.mxu0 %v1508_v13  ;;  %v363_v33 = vld [vmem:[%s2168_s9 + $0x48] sm:$0xff]  ;;  %v1530_v34 = vld [vmem:[#allocation8 + $0xb0] ss:$12 sps:$4 sm:$0xff]   ;;  %v365_v36 = vld [vmem:[%s2168_s9 + $0x58] sm:$0xff]  ;;  %s2476_s5 = sld [smem:[#allocation22_spill]]  ;;  %s2477_s12 = sld [smem:[#allocation28_spill]] }
  0xd6   : > { %639 = vmatprep.subr.bf16.mxu0 %v1509_v14  ;;  %v364_v35 = vld [vmem:[%s2168_s9 + $0x50] sm:$0xff]  ;;  %v366_v37 = vld [vmem:[%s2168_s9 + $0x60] sm:$0xff]  ;;  %v367_v38 = vld [vmem:[%s2168_s9 + $0x68] sm:$0xff]  ;;  %s1049_s21 = sadd.s32 %s1357_s15, %s1356_s11  ;;  %s1036_s13 = scalar_lea.sflag [#allocation4], %s2164_s0 }
  0xd7   : > { %373 = vxpose.xlu0.b32.cont [4/16] %v357_v6, 128  ;;  %1328 = vmatpush3.bf16.msra.mxu1 %v1515_v15  ;;  %v368_v39 = vld [vmem:[%s2168_s9 + $0x70] sm:$0xff]  ;;  %v369_v40 = vld [vmem:[%s2168_s9 + $0x78] sm:$0xff]  ;;  %v2206_v42 = vld [vmem:[%s2176_s25] ss:$0 sm:$0xff]  ;;  %s1272_s17 = sshll.u32 %s1049_s21, 6  ;;  %s1677_s9 = scalar_lea.vmem %s2342_s18, 3072 }
  0xd8   : > { %1329 = vmatprep.subr.bf16.mxu1 %v1519_v19  ;;  %v2210_v44 = vld [vmem:[%s2182_s1] ss:$0 sm:$0xff]  ;;  %p1678_p10 = scmp.ne.s32.totalorder %s2342_s18, %s1677_s9  ;;  %s1820_s8 = smov [#allocation11]  }
  0xd9   : > { %640 = vmatpush1.bf16.msra.mxu0 %v1512_v17  ;;  %s1681_s30 = sshll.u32 %s1820_s8, 4  ;;  %s1682_s30 = int_to_ptr.vmem [resolvable:$false] %s1681_s30 }
  0xda   : > { %641 = vmatprep.subr.bf16.mxu0 %v1513_v18  ;;  %s1683_s3 = scalar_lea.vmem %s1682_s30, 6144  ;;  %p1684_p0 = scmp.lt.s32.totalorder %s2342_s18, %s1682_s30 }
  0xdb   : > { %374 = vxpose.xlu0.b32.cont [5/16] %v358_v11, 128  ;;  %1330 = vmatpush3.bf16.msra.mxu1 %v1519_v19  ;;  %s2340_s10 = scalar_lea.hbm %s2477_s12, %s1272_s17  ;;  %p2478_p12 = scmp.ne.s32.totalorder %s2476_s5, 0 }
  0xdc   : > { %1331 = vmatprep.subr.bf16.mxu1 %v1523_v23  ;;  %p1685_p4 = scmp.lt.s32.totalorder %s1683_s3, %s1677_s9 }
  0xdd   : > { %642 = vmatpush1.bf16.msra.mxu0 %v1516_v21  ;;  %p1679_p2 = pnand %p1678_p10, %p2478_p12 }
  0xde   : > { %643 = vmatprep.subr.bf16.mxu0 %v1517_v22  ;;  %p1686_p11 = por %p1685_p4, %p1684_p0 }
  0xdf   : > { %375 = vxpose.xlu0.b32.cont [6/16] %v359_v16, 128  ;;  %1332 = vmatpush3.bf16.msra.mxu1 %v1523_v23  ;;  %p1680_p13 = pneg %p1679_p2 }
  0xe0   : > { %1333 = vmatprep.subr.bf16.mxu1 %v1527_v27 }
  0xe1   : > { %644 = vmatpush1.bf16.msra.mxu0 %v1520_v24  ;;  %p1687_p7 = pnand %p1686_p11, %p1680_p13 }
  0xe2   : > { %645 = vmatprep.subr.bf16.mxu0 %v1521_v26 }
  0xe3   : > { %376 = vxpose.xlu0.b32.cont [7/16] %v360_v20, 128  ;;  %1334 = vmatpush3.bf16.msra.mxu1 %v1527_v27 }
  0xe4   : > { %1335 = vmatprep.subr.bf16.mxu1 %v1529_v31 }
  0xe5   : > { %646 = vmatpush1.bf16.msra.mxu0 %v1524_v28 }
  0xe6   : > { %647 = vmatprep.subr.bf16.mxu0 %v1525_v30 }
  0xe7   : > { %377 = vxpose.xlu0.b32.cont [8/16] %v361_v25, 128  ;;  %1336 = vmatpush3.bf16.msra.mxu1 %v1529_v31 }
  0xe8   : > { %1337 = vmatprep.subr.bf16.mxu1 %v1530_v34 }
  0xe9   : > { %648 = vmatpush1.bf16.msra.mxu0 %v1528_v32 }
  0xeb   : > { %378 = vxpose.xlu0.b32.cont [9/16] %v362_v29, 128  ;;  %1338 = vmatpush3.bf16.msra.mxu1 %v1530_v34 }
  0xef   : > { %379 = vxpose.xlu0.b32.cont [10/16] %v363_v33, 128 }
  0xf3   : > { %380 = vxpose.xlu0.b32.cont [11/16] %v364_v35, 128 }
  0xf7   : > { %381 = vxpose.xlu0.b32.cont [12/16] %v365_v36, 128  ;;  %v490_v36 = vlaneseq }
  0xfb   : > { %382 = vxpose.xlu0.b32.cont [13/16] %v366_v37, 128  ;;  %v491_v37 = vshrl.u32 %v490_v36, 7 }
  0xff   : > { %383 = vxpose.xlu0.b32.cont [14/16] %v367_v38, 128  ;;  %v492_v38 = vsub.s32 0, %v491_v37 }
 0x103   : > { %384 = vxpose.xlu0.b32.cont [15/16] %v368_v39, 128  ;;  %v488_v39 = vld [vmem:[#allocation10] sm:$0x7] }
 0x107   : > { %385 = vxpose.xlu0.b32.end [16/16] %v369_v40, 128  ;;  %v496_v40 = vsub.s32 1, %v491_v37 }
 0x14b   : > { %v386_v41 = vpop.trf.xlu0 }
 0x14c   : > { %v409_v43 = vmul.f32 %v2206_v42, %v386_v41  ;;  %v2250_v41 = vrot.slane %v488_v39, %v492_v38 }
 0x14e   : > { %v432_v47 = vadd.f32 %v2210_v44, %v409_v43  ;;  %v2252_v43 = vrot.slane %v488_v39, %v496_v40 }
 0x14f   : > { %v387_v45 = vpop.trf.xlu0 }
 0x150   : > { %v410_v46 = vmul.f32 %v2206_v42, %v387_v45 }
 0x152   : > { %v433_v48 = vadd.f32 %v2210_v44, %v410_v46  ;;  %v500_v46 = vsub.s32 2, %v491_v37 }
 0x153   : > { %v388_v49 = vpop.trf.xlu0 }
 0x154   : > { %v448_v50 = vpack.c.bf16 %v433_v48, %v432_v47  ;;  %v411_v51 = vmul.f32 %v2206_v42, %v388_v49 }
 0x156   : > { %666 = vmatmul.mubr.bf16.vlgmr.msra.gmra.mrb[0].mxu0 %v448_v50  ;;  %1339 = vmatprep.mubr.bf16.mxu1 %v448_v50  ;;  %v434_v54 = vadd.f32 %v2210_v44, %v411_v51 }
 0x157   : > { %v389_v52 = vpop.trf.xlu0  ;;  %675 = vmatprep.mubr.bf16.mxu0 %v1819_v10 }
 0x158   : > { %v412_v53 = vmul.f32 %v2206_v42, %v389_v52  ;;  %v2259_v52 = vrot.slane %v488_v39, %v500_v46 }
 0x15a   : > { %v435_v55 = vadd.f32 %v2210_v44, %v412_v53 }
 0x15b   : > { %v390_v56 = vpop.trf.xlu0 }
 0x15c   : > { %v449_v57 = vpack.c.bf16 %v435_v55, %v434_v54  ;;  %v413_v58 = vmul.f32 %v2206_v42, %v390_v56 }
 0x15e   : > { %676 = vmatmul.mubr.bf16.gmra.mrb[4].mxu0 %v449_v57  ;;  %1340 = vmatmul.mubr.bf16.vlgmr.msra.gmra.mrb[0].mxu1 %v449_v57  ;;  %v436_v61 = vadd.f32 %v2210_v44, %v413_v58 }
 0x15f   : > { %v391_v59 = vpop.trf.xlu0  ;;  %685 = vmatprep.mubr.bf16.mxu0 %v1819_v10 }
 0x160   : > { %v414_v60 = vmul.f32 %v2206_v42, %v391_v59 }
 0x162   : > { %v437_v62 = vadd.f32 %v2210_v44, %v414_v60 }
 0x163   : > { %v392_v63 = vpop.trf.xlu0 }
 0x164   : > { %v450_v0 = vpack.c.bf16 %v437_v62, %v436_v61  ;;  %v415_v1 = vmul.f32 %v2206_v42, %v392_v63 }
 0x166   : > { %686 = vmatmul.mubr.bf16.gmra.mrb[8].mxu0 %v450_v0  ;;  %1343 = vmatprep.mubr.bf16.mxu1 %v450_v0  ;;  %v438_v4 = vadd.f32 %v2210_v44, %v415_v1 }
 0x167   : > { %v393_v2 = vpop.trf.xlu0  ;;  %695 = vmatprep.mubr.bf16.mxu0 %v1819_v10 }
 0x168   : > { %v416_v3 = vmul.f32 %v2206_v42, %v393_v2 }
 0x16a   : > { %v439_v5 = vadd.f32 %v2210_v44, %v416_v3 }
 0x16b   : > { %v394_v6 = vpop.trf.xlu0 }
 0x16c   : > { %v451_v7 = vpack.c.bf16 %v439_v5, %v438_v4  ;;  %v417_v8 = vmul.f32 %v2206_v42, %v394_v6 }
 0x16e   : > { %696 = vmatmul.mubr.bf16.gmra.mrb[12].mxu0 %v451_v7  ;;  %1344 = vmatmul.mubr.bf16.gmra.mrb[4].mxu1 %v451_v7  ;;  %v440_v12 = vadd.f32 %v2210_v44, %v417_v8 }
 0x16f   : > { %v395_v9 = vpop.trf.xlu0  ;;  %705 = vmatprep.mubr.bf16.mxu0 %v1819_v10 }
 0x170   : > { %v418_v11 = vmul.f32 %v2206_v42, %v395_v9 }
 0x172   : > { %v441_v13 = vadd.f32 %v2210_v44, %v418_v11 }
 0x173   : > { %v396_v14 = vpop.trf.xlu0 }
 0x174   : > { %v452_v15 = vpack.c.bf16 %v441_v13, %v440_v12  ;;  %v419_v16 = vmul.f32 %v2206_v42, %v396_v14 }
 0x176   : > { %706 = vmatmul.mubr.bf16.gmra.mrb[16].mxu0 %v452_v15  ;;  %1347 = vmatprep.mubr.bf16.mxu1 %v452_v15  ;;  %v442_v19 = vadd.f32 %v2210_v44, %v419_v16 }
 0x177   : > { %v397_v17 = vpop.trf.xlu0  ;;  %715 = vmatprep.mubr.bf16.mxu0 %v1819_v10 }
 0x178   : > { %v420_v18 = vmul.f32 %v2206_v42, %v397_v17 }
 0x17a   : > { %v443_v20 = vadd.f32 %v2210_v44, %v420_v18 }
 0x17b   : > { %v398_v21 = vpop.trf.xlu0 }
 0x17c   : > { %v453_v22 = vpack.c.bf16 %v443_v20, %v442_v19  ;;  %v421_v23 = vmul.f32 %v2206_v42, %v398_v21 }
 0x17e   : > { %716 = vmatmul.mubr.bf16.gmra.mrb[20].mxu0 %v453_v22  ;;  %1348 = vmatmul.mubr.bf16.gmra.mrb[8].mxu1 %v453_v22  ;;  %v444_v26 = vadd.f32 %v2210_v44, %v421_v23 }
 0x17f   : > { %v399_v24 = vpop.trf.xlu0  ;;  %725 = vmatprep.mubr.bf16.mxu0 %v1819_v10 }
 0x180   : > { %v422_v25 = vmul.f32 %v2206_v42, %v399_v24 }
 0x182   : > { %v445_v27 = vadd.f32 %v2210_v44, %v422_v25 }
 0x183   : > { %v400_v28 = vpop.trf.xlu0 }
 0x184   : > { %v454_v29 = vpack.c.bf16 %v445_v27, %v444_v26  ;;  %v423_v30 = vmul.f32 %v2206_v42, %v400_v28 }
 0x186   : > { %726 = vmatmul.mubr.bf16.gmra.mrb[24].mxu0 %v454_v29  ;;  %1351 = vmatprep.mubr.bf16.mxu1 %v454_v29  ;;  %v446_v33 = vadd.f32 %v2210_v44, %v423_v30 }
 0x187   : > { %v401_v31 = vpop.trf.xlu0  ;;  %735 = vmatprep.mubr.bf16.mxu0 %v1819_v10 }
 0x188   : > { %v424_v32 = vmul.f32 %v2206_v42, %v401_v31 }
 0x18a   : > { %v447_v34 = vadd.f32 %v2210_v44, %v424_v32 }
 0x18c   : > { %v455_v35 = vpack.c.bf16 %v447_v34, %v446_v33 }
 0x18e   : > { %736 = vmatmul.mubr.bf16.gmra.mrb[28].mxu0 %v455_v35  ;;  %1352 = vmatmul.mubr.bf16.gmra.mrb[12].mxu1 %v455_v35 }
 0x229   : > { %v667_v10 = vpop.f32.mrb[0].mxu0 }
 0x22a   : > { %v668_v42 = vadd.f32 %v667_v10, %v2250_v41  ;;  %v669_v45 = vpop.f32.mrb[1].mxu0 }
 0x22b   : > { %v670_v44 = vadd.f32 %v669_v45, %v2252_v43  ;;  %v671_v47 = vpop.f32.mrb[2].mxu0 }
 0x22c   : > { %v672_v48 = vadd.f32 %v671_v47, %v2250_v41  ;;  %v673_v49 = vpop.f32.mrb[3].mxu0 }
 0x22d   : > { %v1275_v50 = vpack.c.bf16 %v670_v44, %v668_v42  ;;  %v674_v51 = vadd.f32 %v673_v49, %v2252_v43 }
 0x22f   : > { %1003 = vst [vmem:[%s2261_s6] sm:$0xff] %v1275_v50  ;;  %v1277_v53 = vpack.c.bf16 %v674_v51, %v672_v48 }
 0x231   : > { %1005 = vst [vmem:[%s2261_s6 + $0xc] sm:$0xff] %v1277_v53  ;;  %v677_v54 = vpop.f32.mrb[4].mxu0  ;;  %v1341_v55 = vpop.f32.mrb[0].mxu1 }
 0x232   : > { %v678_v56 = vadd.f32 %v677_v54, %v2250_v41  ;;  %v789_v57 = vadd.f32 %v1341_v55, %v2259_v52  ;;  %v679_v58 = vpop.f32.mrb[5].mxu0  ;;  %v780_v59 = vpop.f32.mrb[1].mxu1 }
 0x233   : > { %v680_v60 = vadd.f32 %v679_v58, %v2252_v43  ;;  %v781_v61 = vadd.f32 %v780_v59, %v2259_v52  ;;  %v681_v62 = vpop.f32.mrb[6].mxu0  ;;  %v1342_v63 = vpop.f32.mrb[2].mxu1 }
 0x234   : > { %v1280_v0 = vpack.c.bf16 %v789_v57, %v789_v57  ;;  %v682_v1 = vadd.f32 %v681_v62, %v2250_v41  ;;  %v792_v2 = vadd.f32 %v1342_v63, %v2259_v52  ;;  %v683_v3 = vpop.f32.mrb[7].mxu0  ;;  %v783_v4 = vpop.f32.mrb[3].mxu1 }
 0x235   : > { %v1279_v5 = vpack.c.bf16 %v680_v60, %v678_v56  ;;  %v1276_v6 = vpack.c.bf16 %v781_v61, %v781_v61  ;;  %v684_v7 = vadd.f32 %v683_v3, %v2252_v43  ;;  %v784_v8 = vadd.f32 %v783_v4, %v2259_v52 }
 0x236   : > { %1008 = vst [vmem:[%s2261_s6 + $0x20] sm:$0xf] %v1280_v0  ;;  %v1282_v9 = vpack.c.bf16 %v792_v2, %v792_v2 }
 0x237   : > { %1007 = vst [vmem:[%s2261_s6 + $0x18] sm:$0xff] %v1279_v5  ;;  %1004 = vst [vmem:[%s2261_s6 + $0x8] sm:$0xf] %v1276_v6  ;;  %v1281_v11 = vpack.c.bf16 %v684_v7, %v682_v1  ;;  %v1278_v12 = vpack.c.bf16 %v784_v8, %v784_v8 }
 0x238   : > { %1010 = vst [vmem:[%s2261_s6 + $0x2c] sm:$0xf] %v1282_v9 }
 0x239   : > { %1009 = vst [vmem:[%s2261_s6 + $0x24] sm:$0xff] %v1281_v11  ;;  %1006 = vst [vmem:[%s2261_s6 + $0x14] sm:$0xf] %v1278_v12  ;;  %v687_v13 = vpop.f32.mrb[8].mxu0 }
 0x23a   : > { %v688_v14 = vadd.f32 %v687_v13, %v2250_v41  ;;  %v689_v15 = vpop.f32.mrb[9].mxu0 }
 0x23b   : > { %v690_v16 = vadd.f32 %v689_v15, %v2252_v43  ;;  %v691_v17 = vpop.f32.mrb[10].mxu0 }
 0x23c   : > { %v692_v18 = vadd.f32 %v691_v17, %v2250_v41  ;;  %v693_v19 = vpop.f32.mrb[11].mxu0 }
 0x23d   : > { %v1283_v20 = vpack.c.bf16 %v690_v16, %v688_v14  ;;  %v694_v21 = vadd.f32 %v693_v19, %v2252_v43 }
 0x23f   : > { %1011 = vst [vmem:[%s2261_s6 + $0x30] sm:$0xff] %v1283_v20  ;;  %v1285_v22 = vpack.c.bf16 %v694_v21, %v692_v18 }
 0x241   : > { %1013 = vst [vmem:[%s2261_s6 + $0x3c] sm:$0xff] %v1285_v22  ;;  %v697_v23 = vpop.f32.mrb[12].mxu0  ;;  %v1345_v24 = vpop.f32.mrb[4].mxu1 }
 0x242   : > { %v698_v25 = vadd.f32 %v697_v23, %v2250_v41  ;;  %v805_v26 = vadd.f32 %v1345_v24, %v2259_v52  ;;  %v699_v27 = vpop.f32.mrb[13].mxu0  ;;  %v796_v28 = vpop.f32.mrb[5].mxu1 }
 0x243   : > { %v700_v29 = vadd.f32 %v699_v27, %v2252_v43  ;;  %v797_v30 = vadd.f32 %v796_v28, %v2259_v52  ;;  %v701_v31 = vpop.f32.mrb[14].mxu0  ;;  %v1346_v32 = vpop.f32.mrb[6].mxu1 }
 0x244   : > { %v1288_v33 = vpack.c.bf16 %v805_v26, %v805_v26  ;;  %v702_v34 = vadd.f32 %v701_v31, %v2250_v41  ;;  %v808_v35 = vadd.f32 %v1346_v32, %v2259_v52  ;;  %v703_v36 = vpop.f32.mrb[15].mxu0  ;;  %v799_v37 = vpop.f32.mrb[7].mxu1 }
 0x245   : > { %v1287_v38 = vpack.c.bf16 %v700_v29, %v698_v25  ;;  %v1284_v39 = vpack.c.bf16 %v797_v30, %v797_v30  ;;  %v704_v40 = vadd.f32 %v703_v36, %v2252_v43  ;;  %v800_v10 = vadd.f32 %v799_v37, %v2259_v52 }
 0x246   : > { %1016 = vst [vmem:[%s2261_s6 + $0x50] sm:$0xf] %v1288_v33  ;;  %v1290_v42 = vpack.c.bf16 %v808_v35, %v808_v35 }
 0x247   : > { %1015 = vst [vmem:[%s2261_s6 + $0x48] sm:$0xff] %v1287_v38  ;;  %1012 = vst [vmem:[%s2261_s6 + $0x38] sm:$0xf] %v1284_v39  ;;  %v1289_v45 = vpack.c.bf16 %v704_v40, %v702_v34  ;;  %v1286_v46 = vpack.c.bf16 %v800_v10, %v800_v10 }
 0x248   : > { %1018 = vst [vmem:[%s2261_s6 + $0x5c] sm:$0xf] %v1290_v42 }
 0x249   : > { %1017 = vst [vmem:[%s2261_s6 + $0x54] sm:$0xff] %v1289_v45  ;;  %1014 = vst [vmem:[%s2261_s6 + $0x44] sm:$0xf] %v1286_v46  ;;  %v707_v44 = vpop.f32.mrb[16].mxu0 }
 0x24a   : > { %v708_v47 = vadd.f32 %v707_v44, %v2250_v41  ;;  %v709_v48 = vpop.f32.mrb[17].mxu0 }
 0x24b   : > { %v710_v49 = vadd.f32 %v709_v48, %v2252_v43  ;;  %v711_v50 = vpop.f32.mrb[18].mxu0 }
 0x24c   : > { %v712_v51 = vadd.f32 %v711_v50, %v2250_v41  ;;  %v713_v53 = vpop.f32.mrb[19].mxu0 }
 0x24d   : > { %v1291_v54 = vpack.c.bf16 %v710_v49, %v708_v47  ;;  %v714_v55 = vadd.f32 %v713_v53, %v2252_v43 }
 0x24f   : > { %1019 = vst [vmem:[%s2261_s6 + $0x60] sm:$0xff] %v1291_v54  ;;  %v1293_v56 = vpack.c.bf16 %v714_v55, %v712_v51 }
 0x251   : > { %1021 = vst [vmem:[%s2261_s6 + $0x6c] sm:$0xff] %v1293_v56  ;;  %v717_v57 = vpop.f32.mrb[20].mxu0  ;;  %v1349_v58 = vpop.f32.mrb[8].mxu1 }
 0x252   : > { %v718_v59 = vadd.f32 %v717_v57, %v2250_v41  ;;  %v821_v60 = vadd.f32 %v1349_v58, %v2259_v52  ;;  %v719_v61 = vpop.f32.mrb[21].mxu0  ;;  %v812_v62 = vpop.f32.mrb[9].mxu1 }
 0x253   : > { %v720_v63 = vadd.f32 %v719_v61, %v2252_v43  ;;  %v813_v0 = vadd.f32 %v812_v62, %v2259_v52  ;;  %v721_v1 = vpop.f32.mrb[22].mxu0  ;;  %v1350_v2 = vpop.f32.mrb[10].mxu1 }
 0x254   : > { %v1296_v3 = vpack.c.bf16 %v821_v60, %v821_v60  ;;  %v722_v4 = vadd.f32 %v721_v1, %v2250_v41  ;;  %v824_v5 = vadd.f32 %v1350_v2, %v2259_v52  ;;  %v723_v6 = vpop.f32.mrb[23].mxu0  ;;  %v815_v7 = vpop.f32.mrb[11].mxu1 }
 0x255   : > { %v1295_v8 = vpack.c.bf16 %v720_v63, %v718_v59  ;;  %v1292_v9 = vpack.c.bf16 %v813_v0, %v813_v0  ;;  %v724_v11 = vadd.f32 %v723_v6, %v2252_v43  ;;  %v816_v12 = vadd.f32 %v815_v7, %v2259_v52 }
 0x256   : > { %1024 = vst [vmem:[%s2261_s6 + $0x80] sm:$0xf] %v1296_v3  ;;  %v1298_v13 = vpack.c.bf16 %v824_v5, %v824_v5 }
 0x257   : > { %1023 = vst [vmem:[%s2261_s6 + $0x78] sm:$0xff] %v1295_v8  ;;  %1020 = vst [vmem:[%s2261_s6 + $0x68] sm:$0xf] %v1292_v9  ;;  %v1297_v14 = vpack.c.bf16 %v724_v11, %v722_v4  ;;  %v1294_v15 = vpack.c.bf16 %v816_v12, %v816_v12 }
 0x258   : > { %1026 = vst [vmem:[%s2261_s6 + $0x8c] sm:$0xf] %v1298_v13 }
 0x259   : > { %1025 = vst [vmem:[%s2261_s6 + $0x84] sm:$0xff] %v1297_v14  ;;  %1022 = vst [vmem:[%s2261_s6 + $0x74] sm:$0xf] %v1294_v15  ;;  %v727_v16 = vpop.f32.mrb[24].mxu0 }
 0x25a   : > { %v728_v17 = vadd.f32 %v727_v16, %v2250_v41  ;;  %v729_v18 = vpop.f32.mrb[25].mxu0 }
 0x25b   : > { %v730_v19 = vadd.f32 %v729_v18, %v2252_v43  ;;  %v731_v20 = vpop.f32.mrb[26].mxu0 }
 0x25c   : > { %v732_v21 = vadd.f32 %v731_v20, %v2250_v41  ;;  %v733_v22 = vpop.f32.mrb[27].mxu0 }
 0x25d   : > { %v1299_v23 = vpack.c.bf16 %v730_v19, %v728_v17  ;;  %v734_v24 = vadd.f32 %v733_v22, %v2252_v43 }
 0x25f   : > { %1027 = vst [vmem:[%s2261_s6 + $0x90] sm:$0xff] %v1299_v23  ;;  %v1301_v25 = vpack.c.bf16 %v734_v24, %v732_v21 }
 0x261   : > { %1029 = vst [vmem:[%s2261_s6 + $0x9c] sm:$0xff] %v1301_v25  ;;  %v737_v26 = vpop.f32.mrb[28].mxu0  ;;  %v1353_v27 = vpop.f32.mrb[12].mxu1 }
 0x262   : > { %v738_v28 = vadd.f32 %v737_v26, %v2250_v41  ;;  %v837_v29 = vadd.f32 %v1353_v27, %v2259_v52  ;;  %v739_v30 = vpop.f32.mrb[29].mxu0  ;;  %v828_v31 = vpop.f32.mrb[13].mxu1 }
 0x263   : > { %v740_v32 = vadd.f32 %v739_v30, %v2252_v43  ;;  %v829_v33 = vadd.f32 %v828_v31, %v2259_v52  ;;  %v741_v34 = vpop.f32.mrb[30].mxu0  ;;  %v1354_v35 = vpop.f32.mrb[14].mxu1 }
 0x264   : > { %v1304_v36 = vpack.c.bf16 %v837_v29, %v837_v29  ;;  %v742_v37 = vadd.f32 %v741_v34, %v2250_v41  ;;  %v840_v38 = vadd.f32 %v1354_v35, %v2259_v52  ;;  %v743_v39 = vpop.f32.mrb[31].mxu0  ;;  %v831_v40 = vpop.f32.mrb[15].mxu1 }
 0x265   : > { %v1303_v10 = vpack.c.bf16 %v740_v32, %v738_v28  ;;  %v1300_v42 = vpack.c.bf16 %v829_v33, %v829_v33  ;;  %v744_v45 = vadd.f32 %v743_v39, %v2252_v43  ;;  %v832_v46 = vadd.f32 %v831_v40, %v2259_v52 }
 0x266   : > { %1032 = vst [vmem:[%s2261_s6 + $0xb0] sm:$0xf] %v1304_v36  ;;  %v1306_v44 = vpack.c.bf16 %v840_v38, %v840_v38 }
 0x267   : > { %1031 = vst [vmem:[%s2261_s6 + $0xa8] sm:$0xff] %v1303_v10  ;;  %1028 = vst [vmem:[%s2261_s6 + $0x98] sm:$0xf] %v1300_v42  ;;  %v1305_v41 = vpack.c.bf16 %v744_v45, %v742_v37  ;;  %v1302_v47 = vpack.c.bf16 %v832_v46, %v832_v46 }
 0x268   : > { %1034 = vst [vmem:[%s2261_s6 + $0xbc] sm:$0xf] %v1306_v44 }
 0x269   : > { %1033 = vst [vmem:[%s2261_s6 + $0xb4] sm:$0xff] %v1305_v41  ;;  %1030 = vst [vmem:[%s2261_s6 + $0xa4] sm:$0xf] %v1302_v47 }
 0x26a   : > { %1690 = shalt.err (!%p1687_p7)
}
 0x26b   : > { %s1691_s25 = scalar_lea.hbm %s2340_s10, 3072  ;;  %s1695_s6 = scalar_lea.hbm %s2477_s12, 12288 }
 0x26c   : > { %p1692_p9 = scmp.ne.s32.totalorder %s2340_s10, %s1691_s25  ;;  %p1696_p6 = scmp.lt.u32.totalorder %s2340_s10, %s2477_s12 }
 0x26d   : > { %p1697_p5 = scmp.lt.u32.totalorder %s1695_s6, %s1691_s25  ;;  %p1699_p10 = scmp.lt.u32.totalorder %s1691_s25, %s2340_s10 }
 0x26e   : > { %p1693_p3 = pnand %p1692_p9, %p2478_p12 }
 0x26f   : > { %p1698_p8 = por %p1697_p5, %p1696_p6 }
 0x270   : > { %p1694_p1 = pneg %p1693_p3 }
 0x271   : > { %p1700_p2 = por %p1699_p10, %p1698_p8 }
 0x273   : > { %p1701_p13 = pnand %p1700_p2, %p1694_p1 }
 0x275   : > { %1704 = shalt.err (!%p1701_p13)
}
 0x276   : > { %s1821_s11 = smov 192   ;;  %s1822_s15 = smov 12  }
 0x277   : > { %1372 = dma.vmem_to_hbm [thread:$0]  (%p2478_p12), %s2342_s18, 3072, %s2340_s10, %s1036_s13, %s1821_s11, %s1821_s11, %s1822_s15  }
 0x278 PF: > { %s2479_s21 = sld [smem:[#allocation16_spill]]  ;;  %s2480_s17 = sld [smem:[#allocation19_spill]] }
 0x279   : > { %p1400_p0 = scmp.ge.s32.totalorder %s1807_s28, 2 }
 0x27e   : > { %s1067_s7 = sand.u32 1, %s2479_s21   ;;  %p2481_p4 = scmp.ne.s32.totalorder %s2480_s17, 0 }
 0x27f   : > { %s1068_s14 = scalar_lea.sflag [#allocation4], %s1067_s7 }
 0x280   : > { %p1392_p11 = pnand %p1400_p0, %p2481_p4 }
 0x282   : > { %1762 = dma.done.wait (!%p1392_p11), %s1068_s14, 3072  }
 0x283   : > { %1764 = vsyncadd (!%p1392_p11), %s1068_s14, 4294964224  ;;  %s25_s28 = sadd.s32 1, %s1807_s28   ;;  %s2482_s9 = sld [smem:[#allocation23_spill]] }
 0x284   : > { %p22_p7 = scmp.ge.s32.totalorder %s25_s28, 6   ;;  %s2483_s0 = sld [smem:[#allocation24_spill]] }
 0x285   : > { %s2484_s5 = sld [smem:[#allocation20_spill]]  ;;  %s2485_s10 = sld [smem:[#allocation21_spill]] }
 0x286   : > { %s2486_s18 = smov %s1771_s19  ;;  %s2487_s19 = smov %s1775_s20 }
 0x287   : > { %s2489_s21 = smov %s1783_s22  ;;  %s2490_s22 = smov %s1787_s23 }
 0x288   : > { %s2492_s24 = smov %s1799_s26  ;;  %s2493_s25 = smov %s1803_s27 }
 0x289   : > { %s2488_s20 = smov %s2482_s9  ;;  %24 = sbr.rel (!%p22_p7) target bundleno = 17 (0x11), region = 117 }
 0x28a   : > { %s2491_s23 = smov %s2483_s0 }
 0x28b   : > { %s2494_s26 = smov %s2484_s5  ;;  %s2495_s27 = smov %s2485_s10 }
 0x290   :  { %1073 = vsyncpa [#allocation3], 1 }
 0x291   :  { %1075 = vsyncpa [#allocation3 + $0x1], 1 }
 0x292   :  { %1076 = vsyncpa [#allocation6], 1 }
 0x293   :  { %1078 = vsyncpa [#allocation6 + $0x1], 1 }
 0x294   :  { %1079 = vsyncpa [#allocation9], 1 }
 0x295   :  { %1080 = vsyncpa [#allocation4], 1 }
 0x296   :  { %1082 = vsyncpa [#allocation4 + $0x1], 1 }

</bundles_post_ra>
